<compile_context>
chip_gen: v7x
topology: tpu7x:2x2x1
jax: 0.10.0
libtpu: 0.0.40
codegen_flags: <defaults>
</compile_context>

<pallas_src>
import functools

import jax
import jax.numpy as jnp
from jax.experimental import pallas as pl
from jax.experimental.pallas import tpu as pltpu

LANES = 128
SUBLANES = 8
_N_MOMENTS = 5  # sum_x, sum_y, sum_xx, sum_yy, sum_xy


def _round_up(a: int, b: int) -> int:
    return ((a + b - 1) // b) * b


def _moments_kernel(x_ref, y_ref, acc_ref, *, bm, rows, per_core, need_mask):
    """Accumulate raw moments of the current (bm, 128) tile into a resident
    lane-dense (1, 5, 8, 128) f32 output block (one block per core-split)."""
    i = pl.program_id(1)

    @pl.when(i == 0)
    def _init():
        acc_ref[...] = jnp.zeros_like(acc_ref)

    # Upcast in-kernel: HBM traffic stays in the native dtype (bf16 callers
    # stream half the bytes); math is always f32.
    x = x_ref[...].astype(jnp.float32)
    y = y_ref[...].astype(jnp.float32)

    if need_mask:
        # Valid rows in this block = rows - g*bm  (<=0 for duplicated dummy
        # blocks of the core split, <bm for the partial tail block).
        c = pl.program_id(0)
        g = c * per_core + i  # unclamped global block index
        limit = rows - g * bm
        row = jax.lax.broadcasted_iota(jnp.int32, (bm, LANES), 0)
        keep = row < limit
        x = jnp.where(keep, x, 0.0)
        y = jnp.where(keep, y, 0.0)

    def part(v):
        # (bm, 128) -> (8, 128) partial sums via leading-axis reduce:
        # pure VPU vreg adds, no cross-lane XLU work.
        return jnp.sum(v.reshape(bm // SUBLANES, SUBLANES, LANES), axis=0)

    acc_ref[0, 0] += part(x)
    acc_ref[0, 1] += part(y)
    acc_ref[0, 2] += part(x * x)
    acc_ref[0, 3] += part(y * y)
    acc_ref[0, 4] += part(x * y)


def _lane_dense_view(a: jax.Array) -> jax.Array:
    """Flatten (free) and view as (rows, 128) in the NATIVE dtype.

    Zero-copy when a.size is a multiple of 1024 (8x128); otherwise zero-pads
    the flat array up to the next multiple of 1024 (zeros contribute nothing
    to raw moments; true element count is used in the epilogue).
    """
    # TODO(synk): the misaligned tail could also be masked by flat index with
    # a 1-D BlockSpec to avoid even this small pad copy.
    flat = a.reshape(-1)
    total = _round_up(flat.shape[0], SUBLANES * LANES)
    if total != flat.shape[0]:
        flat = jnp.pad(flat, (0, total - flat.shape[0]))
    return flat.reshape(total // LANES, LANES)


def _ccc_from_moments(moments: jax.Array, n_elems: int, eps: float) -> jax.Array:
    """Scalar epilogue (plain JAX, fused by XLA): 1 - CCC from raw moments."""
    n = jnp.float32(n_elems)
    sum_x, sum_y, sum_xx, sum_yy, sum_xy = (moments[k] for k in range(_N_MOMENTS))

    x_m = sum_x / n
    y_m = sum_y / n
    # Centered sums from raw moments (clamped >=0 against f32 cancellation).
    sxx = jnp.maximum(sum_xx - n * x_m * x_m, 0.0)
    syy = jnp.maximum(sum_yy - n * y_m * y_m, 0.0)
    sxy = sum_xy - n * x_m * y_m

    # Pearson correlation with eps guard (same placement as the torch code).
    rho = sxy / (jnp.sqrt(sxx) * jnp.sqrt(syy) + jnp.float32(eps))

    # torch.std default: unbiased (N - 1) over the flattened tensor.
    x_s = jnp.sqrt(sxx / (n - 1.0))
    y_s = jnp.sqrt(syy / (n - 1.0))

    # NOTE: like the PyTorch module, the CCC denominator has no eps, so
    # constant-and-equal inputs give NaN (documented behaviour).
    ccc = (2.0 * rho * x_s * y_s) / (x_s * x_s + y_s * y_s + (x_m - y_m) ** 2)
    return (1.0 - ccc).astype(jnp.float32)


def ccc_loss(
    x: jax.Array,
    y: jax.Array,
    eps: float = 1e-8,
    *,
    block_rows: int = 4096,
    num_core_splits: int = 2,
    use_pallas=None,
) -> jax.Array:
    """1 - CCC. Pallas TPU moment-reduction kernel + fused JAX epilogue.

    block_rows: rows (x128 lanes) per tile. 4096 (2 MiB f32/input tile) is a
        good default everywhere; ~2048 is enough on v5e, 8192 helps on v7x.
    num_core_splits: size of the leading "parallel" grid axis (set 2 for
        v7x's two TensorCores; harmless serial loop on v5e/v6e).
    use_pallas: True -> always use the kernel; False -> pure JAX; None ->
        auto (kernel only for >= ~1M elements, where HBM streaming dominates).
    """
    assert x.shape == y.shape
    n_elems = x.size
    assert n_elems >= 2, "CCC needs at least 2 elements (std divides by N-1)."

    if use_pallas is None:
        use_pallas = n_elems >= (1 << 20)
    if not use_pallas:
        return _ccc_loss_ref(x, y, eps)

    x2d = _lane_dense_view(x)
    y2d = _lane_dense_view(y)
    rows = x2d.shape[0]  # always a multiple of 8

    block_rows = max(_round_up(int(block_rows), SUBLANES), SUBLANES)
    bm = rows if rows <= block_rows else block_rows
    total_blocks = pl.cdiv(rows, bm)
    nc = max(1, min(int(num_core_splits), total_blocks))
    per_core = pl.cdiv(total_blocks, nc)
    # Mask only when the tail block is partial or the core split duplicates a
    # (clamped) block; otherwise no masking ops are emitted at all.
    need_mask = (total_blocks * bm != rows) or (per_core * nc != total_blocks)
    last_block = total_blocks - 1

    def in_idx(c, i):
        # Clamp so a duplicated tail block never DMAs out of bounds; its
        # contribution is zeroed by the in-kernel mask.
        return (jnp.minimum(c * per_core + i, last_block), 0)

    kernel = functools.partial(
        _moments_kernel, bm=bm, rows=rows, per_core=per_core, need_mask=need_mask
    )

    out_bytes = nc * _N_MOMENTS * SUBLANES * LANES * 4
    cost = pl.CostEstimate(
        flops=10 * n_elems,
        transcendentals=0,
        bytes_accessed=int(
            x2d.size * x2d.dtype.itemsize + y2d.size * y2d.dtype.itemsize + out_bytes
        ),
    )

    # Double-buffered input tiles + resident accumulator blocks.
    vmem_need = 2 * bm * LANES * (x2d.dtype.itemsize + y2d.dtype.itemsize) + out_bytes
    compiler_kwargs = dict(dimension_semantics=("parallel", "arbitrary"))
    if vmem_need > (12 << 20):
        compiler_kwargs["vmem_limit_bytes"] = int(min(vmem_need + (8 << 20), 64 << 20))

    partials = pl.pallas_call(
        kernel,
        out_shape=jax.ShapeDtypeStruct((nc, _N_MOMENTS, SUBLANES, LANES), jnp.float32),
        grid=(nc, per_core),
        in_specs=[
            pl.BlockSpec((bm, LANES), in_idx),
            pl.BlockSpec((bm, LANES), in_idx),
        ],
        out_specs=pl.BlockSpec(
            (1, _N_MOMENTS, SUBLANES, LANES), lambda c, i: (c, 0, 0, 0)
        ),
        compiler_params=pltpu.CompilerParams(**compiler_kwargs),
        cost_estimate=cost,
    )(x2d, y2d)

    moments = jnp.sum(partials, axis=(0, 2, 3))  # (5,) cross-lane reduce, fused by XLA
    return _ccc_from_moments(moments, n_elems, eps)


def _ccc_loss_ref(x, y, eps=1e-8):
    """Pure-JAX reference mirroring the PyTorch forward exactly."""
    x = x.astype(jnp.float32)
    y = y.astype(jnp.float32)
    vx = x - jnp.mean(x)
    vy = y - jnp.mean(y)
    rho = jnp.sum(vx * vy) / (
        jnp.sqrt(jnp.sum(vx ** 2)) * jnp.sqrt(jnp.sum(vy ** 2)) + eps
    )
    x_m = jnp.mean(x)
    y_m = jnp.mean(y)
    n = x.size
    x_s = jnp.sqrt(jnp.sum((x - x_m) ** 2) / (n - 1))  # torch.std (unbiased)
    y_s = jnp.sqrt(jnp.sum((y - y_m) ** 2) / (n - 1))
    ccc = 2 * rho * x_s * y_s / (x_s ** 2 + y_s ** 2 + (x_m - y_m) ** 2)
    return 1 - ccc


if __name__ == "__main__":
    # 1) Module-natural tiny shape (n, 2): single padded block, no masking.
    key = jax.random.PRNGKey(0)
    kx, ky = jax.random.split(key)
    n = 16
    x = jax.random.normal(kx, (n, 2), dtype=jnp.float32)
    y = 0.7 * x + 0.3 * jax.random.normal(ky, (n, 2), dtype=jnp.float32)
    loss = ccc_loss(x, y, use_pallas=True)  # force the Pallas path for the demo
    jax.block_until_ready(loss)
    ref = _ccc_loss_ref(x, y)
    assert jnp.allclose(loss, ref, atol=3e-4, rtol=3e-4), (loss, ref)

    # 2) Multi-block grid, 2-way core split, duplicated (fully masked) tail block.
    kx2, ky2 = jax.random.split(jax.random.PRNGKey(1))
    n2 = 3000
    x2 = jax.random.normal(kx2, (n2, 2), dtype=jnp.float32)
    y2 = 0.5 * x2 + 0.5 * jax.random.normal(ky2, (n2, 2), dtype=jnp.float32)
    loss2 = ccc_loss(x2, y2, block_rows=16, num_core_splits=2, use_pallas=True)
    jax.block_until_ready(loss2)
    ref2 = _ccc_loss_ref(x2, y2)
    assert jnp.allclose(loss2, ref2, atol=3e-4, rtol=3e-4), (loss2, ref2)

    # 3) Aligned (zero-copy, no pad) bf16 path: native-dtype streaming with a
    #    partial tail block masked in-kernel.
    kx3, ky3 = jax.random.split(jax.random.PRNGKey(2))
    n3 = 8192  # 2*n3 = 16384 elements = 16 * 1024 -> zero-copy lane-dense view
    x3 = jax.random.normal(kx3, (n3, 2), dtype=jnp.float32).astype(jnp.bfloat16)
    y3 = (
        0.8 * x3.astype(jnp.float32)
        + 0.2 * jax.random.normal(ky3, (n3, 2), dtype=jnp.float32)
    ).astype(jnp.bfloat16)
    loss3 = ccc_loss(x3, y3, block_rows=48, use_pallas=True)
    jax.block_until_ready(loss3)
    ref3 = _ccc_loss_ref(x3, y3)
    assert jnp.allclose(loss3, ref3, atol=3e-3, rtol=3e-3), (loss3, ref3)

    print("KERNEL_OK")
</pallas_src>

<mosaic_0001>
module attributes {stable_mosaic.version = 11 : i64} {
  func.func @_moments_kernel(%arg0: i32, %arg1: i32, %arg2: memref<8x128xf32, #tpu.memory_space<vmem>>, %arg3: memref<8x128xf32, #tpu.memory_space<vmem>>, %arg4: memref<1x5x8x128xf32, #tpu.memory_space<vmem>>) attributes {dimension_semantics = [#tpu.dimension_semantics<parallel>, #tpu.dimension_semantics<arbitrary>], iteration_bounds = array<i64: 1, 1>, scalar_prefetch = 0 : i64, scratch_operands = 0 : i64, tpu.core_type = #tpu.core_type<tc>, window_params = [{transform_indices = @transform_0, window_bounds = array<i64: 8, 128>}, {transform_indices = @transform_1, window_bounds = array<i64: 8, 128>}, {transform_indices = @transform_2, window_bounds = array<i64: 1, 5, 8, 128>}]} {
    %c0_i32 = arith.constant 0 : i32
    %0 = arith.cmpi eq, %arg1, %c0_i32 : i32
    %1 = arith.extui %0 : i1 to i32
    %c0_i32_0 = arith.constant 0 : i32
    %2 = arith.cmpi ne, %1, %c0_i32_0 : i32
    scf.if %2 {
      %cst_44 = arith.constant 0.000000e+00 : f32
      %48 = vector.broadcast %cst_44 : f32 to vector<1x5x8x128xf32>
      %c0_45 = arith.constant 0 : index
      %c0_46 = arith.constant 0 : index
      %c0_47 = arith.constant 0 : index
      %c0_48 = arith.constant 0 : index
      %49 = vector.load %arg4[%c0_45, %c0_46, %c0_47, %c0_48] : memref<1x5x8x128xf32, #tpu.memory_space<vmem>>, vector<1x5x8x128xf32>
      tpu.vector_store %arg4[%c0_45, %c0_46, %c0_47, %c0_48], %48 {strides = array<i32>} : memref<1x5x8x128xf32, #tpu.memory_space<vmem>>, vector<1x5x8x128xf32>,
    } else {
    }
    %c0 = arith.constant 0 : index
    %c0_1 = arith.constant 0 : index
    %3 = vector.load %arg2[%c0, %c0_1] : memref<8x128xf32, #tpu.memory_space<vmem>>, vector<8x128xf32>
    %c0_2 = arith.constant 0 : index
    %c0_3 = arith.constant 0 : index
    %4 = vector.load %arg3[%c0_2, %c0_3] : memref<8x128xf32, #tpu.memory_space<vmem>>, vector<8x128xf32>
    %c0_4 = arith.constant 0 : index
    %c0_5 = arith.constant 0 : index
    %c0_6 = arith.constant 0 : index
    %c0_7 = arith.constant 0 : index
    %5 = vector.load %arg4[%c0_4, %c0_5, %c0_6, %c0_7] : memref<1x5x8x128xf32, #tpu.memory_space<vmem>>, vector<1x1x8x128xf32>
    %6 = vector.shape_cast %5 : vector<1x1x8x128xf32> to vector<8x128xf32>
    %7 = vector.shape_cast %3 : vector<8x128xf32> to vector<1x8x128xf32>
    %cst = arith.constant dense<0.000000e+00> : vector<8x128xf32>
    %8 = vector.multi_reduction <add>, %7, %cst [0] : vector<1x8x128xf32> to vector<8x128xf32>
    %9 = arith.addf %6, %8 : vector<8x128xf32>
    %c0_8 = arith.constant 0 : index
    %c0_9 = arith.constant 0 : index
    %c0_10 = arith.constant 0 : index
    %c0_11 = arith.constant 0 : index
    %10 = vector.load %arg4[%c0_8, %c0_9, %c0_10, %c0_11] : memref<1x5x8x128xf32, #tpu.memory_space<vmem>>, vector<1x1x8x128xf32>
    %11 = vector.shape_cast %10 : vector<1x1x8x128xf32> to vector<8x128xf32>
    %12 = vector.shape_cast %9 : vector<8x128xf32> to vector<1x1x8x128xf32>
    tpu.vector_store %arg4[%c0_8, %c0_9, %c0_10, %c0_11], %12 {strides = array<i32>} : memref<1x5x8x128xf32, #tpu.memory_space<vmem>>, vector<1x1x8x128xf32>,
    %c0_12 = arith.constant 0 : index
    %c1 = arith.constant 1 : index
    %c0_13 = arith.constant 0 : index
    %c0_14 = arith.constant 0 : index
    %13 = vector.load %arg4[%c0_12, %c1, %c0_13, %c0_14] : memref<1x5x8x128xf32, #tpu.memory_space<vmem>>, vector<1x1x8x128xf32>
    %14 = vector.shape_cast %13 : vector<1x1x8x128xf32> to vector<8x128xf32>
    %15 = vector.shape_cast %4 : vector<8x128xf32> to vector<1x8x128xf32>
    %cst_15 = arith.constant dense<0.000000e+00> : vector<8x128xf32>
    %16 = vector.multi_reduction <add>, %15, %cst_15 [0] : vector<1x8x128xf32> to vector<8x128xf32>
    %17 = arith.addf %14, %16 : vector<8x128xf32>
    %c0_16 = arith.constant 0 : index
    %c1_17 = arith.constant 1 : index
    %c0_18 = arith.constant 0 : index
    %c0_19 = arith.constant 0 : index
    %18 = vector.load %arg4[%c0_16, %c1_17, %c0_18, %c0_19] : memref<1x5x8x128xf32, #tpu.memory_space<vmem>>, vector<1x1x8x128xf32>
    %19 = vector.shape_cast %18 : vector<1x1x8x128xf32> to vector<8x128xf32>
    %20 = vector.shape_cast %17 : vector<8x128xf32> to vector<1x1x8x128xf32>
    tpu.vector_store %arg4[%c0_16, %c1_17, %c0_18, %c0_19], %20 {strides = array<i32>} : memref<1x5x8x128xf32, #tpu.memory_space<vmem>>, vector<1x1x8x128xf32>,
    %c0_20 = arith.constant 0 : index
    %c2 = arith.constant 2 : index
    %c0_21 = arith.constant 0 : index
    %c0_22 = arith.constant 0 : index
    %21 = vector.load %arg4[%c0_20, %c2, %c0_21, %c0_22] : memref<1x5x8x128xf32, #tpu.memory_space<vmem>>, vector<1x1x8x128xf32>
    %22 = vector.shape_cast %21 : vector<1x1x8x128xf32> to vector<8x128xf32>
    %23 = arith.mulf %3, %3 : vector<8x128xf32>
    %24 = vector.shape_cast %23 : vector<8x128xf32> to vector<1x8x128xf32>
    %cst_23 = arith.constant dense<0.000000e+00> : vector<8x128xf32>
    %25 = vector.multi_reduction <add>, %24, %cst_23 [0] : vector<1x8x128xf32> to vector<8x128xf32>
    %26 = arith.addf %22, %25 : vector<8x128xf32>
    %c0_24 = arith.constant 0 : index
    %c2_25 = arith.constant 2 : index
    %c0_26 = arith.constant 0 : index
    %c0_27 = arith.constant 0 : index
    %27 = vector.load %arg4[%c0_24, %c2_25, %c0_26, %c0_27] : memref<1x5x8x128xf32, #tpu.memory_space<vmem>>, vector<1x1x8x128xf32>
    %28 = vector.shape_cast %27 : vector<1x1x8x128xf32> to vector<8x128xf32>
    %29 = vector.shape_cast %26 : vector<8x128xf32> to vector<1x1x8x128xf32>
    tpu.vector_store %arg4[%c0_24, %c2_25, %c0_26, %c0_27], %29 {strides = array<i32>} : memref<1x5x8x128xf32, #tpu.memory_space<vmem>>, vector<1x1x8x128xf32>,
    %c0_28 = arith.constant 0 : index
    %c3 = arith.constant 3 : index
    %c0_29 = arith.constant 0 : index
    %c0_30 = arith.constant 0 : index
    %30 = vector.load %arg4[%c0_28, %c3, %c0_29, %c0_30] : memref<1x5x8x128xf32, #tpu.memory_space<vmem>>, vector<1x1x8x128xf32>
    %31 = vector.shape_cast %30 : vector<1x1x8x128xf32> to vector<8x128xf32>
    %32 = arith.mulf %4, %4 : vector<8x128xf32>
    %33 = vector.shape_cast %32 : vector<8x128xf32> to vector<1x8x128xf32>
    %cst_31 = arith.constant dense<0.000000e+00> : vector<8x128xf32>
    %34 = vector.multi_reduction <add>, %33, %cst_31 [0] : vector<1x8x128xf32> to vector<8x128xf32>
    %35 = arith.addf %31, %34 : vector<8x128xf32>
    %c0_32 = arith.constant 0 : index
    %c3_33 = arith.constant 3 : index
    %c0_34 = arith.constant 0 : index
    %c0_35 = arith.constant 0 : index
    %36 = vector.load %arg4[%c0_32, %c3_33, %c0_34, %c0_35] : memref<1x5x8x128xf32, #tpu.memory_space<vmem>>, vector<1x1x8x128xf32>
    %37 = vector.shape_cast %36 : vector<1x1x8x128xf32> to vector<8x128xf32>
    %38 = vector.shape_cast %35 : vector<8x128xf32> to vector<1x1x8x128xf32>
    tpu.vector_store %arg4[%c0_32, %c3_33, %c0_34, %c0_35], %38 {strides = array<i32>} : memref<1x5x8x128xf32, #tpu.memory_space<vmem>>, vector<1x1x8x128xf32>,
    %c0_36 = arith.constant 0 : index
    %c4 = arith.constant 4 : index
    %c0_37 = arith.constant 0 : index
    %c0_38 = arith.constant 0 : index
    %39 = vector.load %arg4[%c0_36, %c4, %c0_37, %c0_38] : memref<1x5x8x128xf32, #tpu.memory_space<vmem>>, vector<1x1x8x128xf32>
    %40 = vector.shape_cast %39 : vector<1x1x8x128xf32> to vector<8x128xf32>
    %41 = arith.mulf %3, %4 : vector<8x128xf32>
    %42 = vector.shape_cast %41 : vector<8x128xf32> to vector<1x8x128xf32>
    %cst_39 = arith.constant dense<0.000000e+00> : vector<8x128xf32>
    %43 = vector.multi_reduction <add>, %42, %cst_39 [0] : vector<1x8x128xf32> to vector<8x128xf32>
    %44 = arith.addf %40, %43 : vector<8x128xf32>
    %c0_40 = arith.constant 0 : index
    %c4_41 = arith.constant 4 : index
    %c0_42 = arith.constant 0 : index
    %c0_43 = arith.constant 0 : index
    %45 = vector.load %arg4[%c0_40, %c4_41, %c0_42, %c0_43] : memref<1x5x8x128xf32, #tpu.memory_space<vmem>>, vector<1x1x8x128xf32>
    %46 = vector.shape_cast %45 : vector<1x1x8x128xf32> to vector<8x128xf32>
    %47 = vector.shape_cast %44 : vector<8x128xf32> to vector<1x1x8x128xf32>
    tpu.vector_store %arg4[%c0_40, %c4_41, %c0_42, %c0_43], %47 {strides = array<i32>} : memref<1x5x8x128xf32, #tpu.memory_space<vmem>>, vector<1x1x8x128xf32>,
    return
  }
  func.func @transform_0(%arg0: i32, %arg1: i32) -> (i32, i32) {
    %c1_i32 = arith.constant 1 : i32
    %0 = arith.muli %arg0, %c1_i32 : i32
    %1 = arith.addi %0, %arg1 : i32
    %c0_i32 = arith.constant 0 : i32
    %2 = arith.minsi %1, %c0_i32 : i32
    %c0_i32_0 = arith.constant 0 : i32
    %c0_i32_1 = arith.constant 0 : i32
    return %2, %c0_i32_0 : i32, i32
  }
  func.func @transform_1(%arg0: i32, %arg1: i32) -> (i32, i32) {
    %c1_i32 = arith.constant 1 : i32
    %0 = arith.muli %arg0, %c1_i32 : i32
    %1 = arith.addi %0, %arg1 : i32
    %c0_i32 = arith.constant 0 : i32
    %2 = arith.minsi %1, %c0_i32 : i32
    %c0_i32_0 = arith.constant 0 : i32
    %c0_i32_1 = arith.constant 0 : i32
    return %2, %c0_i32_0 : i32, i32
  }
  func.func @transform_2(%arg0: i32, %arg1: i32) -> (i32, i32, i32, i32) {
    %c0_i32 = arith.constant 0 : i32
    %c0_i32_0 = arith.constant 0 : i32
    %c0_i32_1 = arith.constant 0 : i32
    %c0_i32_2 = arith.constant 0 : i32
    return %arg0, %c0_i32, %c0_i32_0, %c0_i32_1 : i32, i32, i32, i32
  }
}

</mosaic_0001>

<bundles_post_ra>
// kernel: tpu_custom_call.1
= control target key start
LH: loop header
LB: loop body
LE: loop exit
PB: predicated region body
PF: predicated region fallthrough
CT: control target
= control target key end

     0   :  { %7 = vsyncpa [#allocation3], 0  ;;  %s246_s0 = inlined_call_operand.hbm [shape: f32[8,128], index: 0, kind: input, shape index: {}]   ;;  %s247_s1 = inlined_call_operand.hbm [shape: f32[8,128], index: 1, kind: input, shape index: {}]   ;;  %s248_s2 = inlined_call_operand.hbm [shape: f32[1,5,8,128], index: 2, kind: output, shape index: {}]  }
   0x1   :  { %8 = vsyncpa [#allocation6], 0 }
   0x2   :  { %9 = vsyncpa [#allocation4], 0  ;;  %s190_s9 = smov [#allocation2]   ;;  %s191_s11 = smov [#allocation5]  }
   0x3   :  { %s21_s10 = sshll.u32 %s190_s9, 4  ;;  %s36_s12 = sshll.u32 %s191_s11, 4  ;;  %s22_s10 = int_to_ptr.vmem [resolvable:$true] %s21_s10  ;;  %s37_s12 = int_to_ptr.vmem [resolvable:$true] %s36_s12 }
   0x4   :  { %s118_s15 = scalar_lea.hbm %s246_s0, 128 }
   0x5   :  { %p119_p0 = scmp.ne.s32.totalorder %s246_s0, %s118_s15  ;;  %p122_p1 = scmp.lt.u32.totalorder %s118_s15, %s246_s0 }
   0x7   :  { %p124_p2 = pnand %p122_p1, %p119_p0 }
   0x9   :  { %127 = shalt.err (!%p124_p2)
}
   0xa   :  { %s128_s20 = scalar_lea.vmem %s22_s10, 128  ;;  %p133_p4 = scmp.lt.s32.totalorder %s22_s10, %s22_s10 }
   0xb   :  { %p129_p3 = scmp.ne.s32.totalorder %s22_s10, %s128_s20  ;;  %p134_p5 = scmp.lt.s32.totalorder %s128_s20, %s128_s20 }
   0xd   :  { %p135_p6 = por %p134_p5, %p133_p4 }
   0xf   :  { %p136_p7 = pnand %p135_p6, %p129_p3 }
  0x11   :  { %139 = shalt.err (!%p136_p7)
}
  0x12   :  { %24 = dma.hbm_to_vmem [thread:$0]  %s246_s0, 128, %s22_s10, [#allocation3]  }
  0x13   :  { %s140_s25 = scalar_lea.hbm %s247_s1, 128 }
  0x14   :  { %p141_p8 = scmp.ne.s32.totalorder %s247_s1, %s140_s25  ;;  %p144_p9 = scmp.lt.u32.totalorder %s140_s25, %s247_s1 }
  0x16   :  { %p146_p10 = pnand %p144_p9, %p141_p8 }
  0x18   :  { %149 = shalt.err (!%p146_p10)
}
  0x19   :  { %s150_s30 = scalar_lea.vmem %s37_s12, 128  ;;  %p155_p12 = scmp.lt.s32.totalorder %s37_s12, %s37_s12 }
  0x1a   :  { %p151_p11 = scmp.ne.s32.totalorder %s37_s12, %s150_s30  ;;  %p156_p13 = scmp.lt.s32.totalorder %s150_s30, %s150_s30 }
  0x1c   :  { %p157_p0 = por %p156_p13, %p155_p12 }
  0x1e   :  { %p158_p1 = pnand %p157_p0, %p151_p11 }
  0x20   :  { %161 = shalt.err (!%p158_p1)
}
  0x21   :  { %39 = dma.hbm_to_vmem [thread:$0]  %s247_s1, 128, %s37_s12, [#allocation6]  }
  0x22   :  { %184 = dma.done.wait [#allocation3], 128  }
  0x23   :  { %185 = vsyncadd [#allocation3], 4294967168 }
  0x24   :  { %186 = dma.done.wait [#allocation6], 128  }
  0x25   :  { %187 = vsyncadd [#allocation6], 4294967168  ;;  %v61_v0 = vld [vmem:[#allocation2] sm:$0xff]  ;;  %v62_v1 = vld [vmem:[#allocation5] sm:$0xff]  ;;  %s192_s4 = smov [#allocation7]  }
  0x26   :  { %v74_v2 = vmul.f32 %v61_v0, %v61_v0  ;;  %v80_v3 = vmul.f32 %v62_v1, %v62_v1  ;;  %s95_s5 = sshll.u32 %s192_s4, 4  ;;  %v86_v4 = vmul.f32 %v62_v1, %v61_v0  ;;  %66 = vst [vmem:[#allocation7] sm:$0xff] %v61_v0  ;;  %71 = vst [vmem:[#allocation7 + $0x8] sm:$0xff] %v62_v1  ;;  %s96_s5 = int_to_ptr.vmem [resolvable:$true] %s95_s5 }
  0x27   :  { %s162_s6 = scalar_lea.vmem %s96_s5, 640  ;;  %p167_p3 = scmp.lt.s32.totalorder %s96_s5, %s96_s5 }
  0x28   :  { %77 = vst [vmem:[#allocation7 + $0x10] sm:$0xff] %v74_v2  ;;  %83 = vst [vmem:[#allocation7 + $0x18] sm:$0xff] %v80_v3  ;;  %p163_p2 = scmp.ne.s32.totalorder %s96_s5, %s162_s6  ;;  %p168_p4 = scmp.lt.s32.totalorder %s162_s6, %s162_s6 }
  0x29   :  { %89 = vst [vmem:[#allocation7 + $0x20] sm:$0xff] %v86_v4 }
  0x2a   :  { %p169_p5 = por %p168_p4, %p167_p3 }
  0x2c   :  { %p170_p6 = pnand %p169_p5, %p163_p2 }
  0x2e   :  { %173 = shalt.err (!%p170_p6)
}
  0x2f   :  { %s174_s8 = scalar_lea.hbm %s248_s2, 640 }
  0x30   :  { %p175_p7 = scmp.ne.s32.totalorder %s248_s2, %s174_s8  ;;  %p178_p8 = scmp.lt.u32.totalorder %s174_s8, %s248_s2 }
  0x32   :  { %p180_p9 = pnand %p178_p8, %p175_p7 }
  0x34   :  { %183 = shalt.err (!%p180_p9)
}
  0x35   :  { %s193_s13 = smov 128   ;;  %s194_s14 = smov 8  }
  0x36   :  { %101 = dma.vmem_to_hbm [thread:$0]  %s96_s5, 640, %s248_s2, [#allocation4], %s193_s13, %s193_s13, %s194_s14  }
  0x37   :  { %188 = dma.done.wait [#allocation4], 640  }
  0x38   :  { %189 = vsyncadd [#allocation4], 4294966656 }
  0x39   :  { %105 = vsyncpa [#allocation3], 1 }
  0x3a   :  { %106 = vsyncpa [#allocation6], 1 }
  0x3b   :  { %107 = vsyncpa [#allocation4], 1 }

</bundles_post_ra>
